<compile_context>
chip_gen: v7x
topology: tpu7x:2x2x1
jax: 0.10.0
libtpu: 0.0.40
codegen_flags: <defaults>
</compile_context>

<pallas_src>
import math
import functools

import jax
import jax.numpy as jnp
from jax import lax
from jax.experimental import pallas as pl
from jax.experimental.pallas import tpu as pltpu


_EPS = 1e-12        # F.normalize default eps
_NEG = -1e30        # "minus infinity" for masked (padded) class columns


def _aamsoftmax_kernel(x_ref, w0_ref, w1_ref, label_ref,
                       logits_ref, loss_ref,
                       xn_ref, m_ref, l_ref, picked_ref,
                       *, cos_m, sin_m, th, mm, scale, easy_margin,
                       n_classes, c_pad, block_c, compute_dtype):
    c = pl.program_id(1)
    num_c = pl.num_programs(1)

    # --- normalize embeddings once per batch tile (x block is resident across
    #     the class axis); store directly in bf16 scratch for the MXU. --------
    @pl.when(c == 0)
    def _():
        x = x_ref[...].astype(jnp.float32)
        norm = jnp.maximum(jnp.sqrt(jnp.sum(x * x, axis=-1, keepdims=True)),
                           _EPS)
        xn_ref[...] = (x / norm).astype(compute_dtype)

    xn = xn_ref[...]                                        # (TB, K) bf16

    # --- cosine similarity vs. both (pre-normalized) sub-centers, pair-max ---
    cos0 = jnp.dot(xn, w0_ref[...], preferred_element_type=jnp.float32)
    cos1 = jnp.dot(xn, w1_ref[...], preferred_element_type=jnp.float32)
    cosine = jnp.maximum(cos0, cos1)                        # (TB, TC) f32

    tb, tc = cosine.shape
    lbl_local = label_ref[...] - c * block_c                # (TB, 1) i32
    col = lax.broadcasted_iota(jnp.int32, (tb, tc), 1)
    is_target = col == lbl_local                            # (TB, TC) bool

    # --- additive angular margin: only on the (TB, 1) target cosine ----------
    cos_t = jnp.sum(jnp.where(is_target, cosine, 0.0), axis=-1, keepdims=True)
    sin_t = jnp.sqrt(jnp.maximum(1.0 - cos_t * cos_t, 0.0))
    phi_t = cos_t * cos_m - sin_t * sin_m
    if easy_margin:
        phi_t = jnp.where(cos_t > 0.0, phi_t, cos_t)
    else:
        phi_t = jnp.where(cos_t - th > 0.0, phi_t, cos_t - mm)

    out = jnp.where(is_target, phi_t, cosine) * scale       # (TB, TC) f32
    logits_ref[...] = out

    # --- online logsumexp / target-logit accumulation across class tiles -----
    if c_pad != n_classes:
        # only the last class tile holds padded columns; offset folded into
        # the scalar `limit` so the per-logit cost is one compare + one select
        limit = n_classes - c * block_c
        out_m = jnp.where(col < limit, out, _NEG)
    else:
        out_m = out                                         # statically skipped

    tile_max = jnp.max(out_m, axis=-1, keepdims=True)
    has_target = jnp.logical_and(lbl_local >= 0, lbl_local < block_c)
    tile_picked = jnp.where(has_target, phi_t * scale, 0.0)  # (TB, 1)

    @pl.when(c == 0)
    def _():
        m_ref[...] = tile_max
        l_ref[...] = jnp.sum(jnp.exp(out_m - tile_max), axis=-1, keepdims=True)
        picked_ref[...] = tile_picked

    @pl.when(c > 0)
    def _():
        m_old = m_ref[...]
        m_new = jnp.maximum(m_old, tile_max)
        l_ref[...] = (l_ref[...] * jnp.exp(m_old - m_new)
                      + jnp.sum(jnp.exp(out_m - m_new), axis=-1, keepdims=True))
        picked_ref[...] = picked_ref[...] + tile_picked
        m_ref[...] = m_new

    @pl.when(c == num_c - 1)
    def _():
        # per-sample cross entropy: logsumexp(output) - output[label]
        loss_ref[...] = m_ref[...] + jnp.log(l_ref[...]) - picked_ref[...]


def _round_up(a, b):
    return (a + b - 1) // b * b


def aamsoftmax_forward(x, weight, label, *, margin=0.3, scale=15.0,
                       easy_margin=False, block_b=512, block_c=1024,
                       compute_dtype=jnp.bfloat16):
    """Returns (loss, prec1, logits) matching LossFunction.forward semantics."""
    B, n_out = x.shape
    assert weight.shape[1] == n_out
    n_classes = weight.shape[0] // 2
    assert label.shape == (B,)

    # --- tile sizes ----------------------------------------------------------
    # Batch tile: as large as possible (amortizes weight HBM re-streaming) but
    # keep >= 2 batch tiles when B allows so megacore (v7x) has work per core.
    n_out_pad = _round_up(n_out, 128)             # MXU K alignment (no partial K passes)
    tb = min(block_b, _round_up(B, 8))
    if B > 8:
        tb = min(tb, _round_up(-(-B // 2), 8))
    tc = min(block_c, _round_up(n_classes, 128))
    b_pad = _round_up(B, tb)
    c_pad = _round_up(n_classes, tc)

    # --- glue: normalize weights (f32), cast to bf16, transpose to (K, C),
    #     zero-pad K and C — one fused pass per sub-center, no f32 transpose. --
    w = weight.astype(jnp.float32)

    def _prep(ws):
        nrm = jnp.maximum(jnp.sqrt(jnp.sum(ws * ws, axis=-1, keepdims=True)),
                          _EPS)
        wt = (ws / nrm).astype(compute_dtype).T           # (n_out, C) bf16
        return jnp.pad(wt, ((0, n_out_pad - n_out), (0, c_pad - n_classes)))

    w0 = _prep(w[0::2])
    w1 = _prep(w[1::2])

    xp = jnp.pad(x.astype(jnp.float32),
                 ((0, b_pad - B), (0, n_out_pad - n_out)))
    lbl = jnp.pad(label.astype(jnp.int32), (0, b_pad - B)).reshape(b_pad, 1)

    kernel = functools.partial(
        _aamsoftmax_kernel,
        cos_m=math.cos(margin), sin_m=math.sin(margin),
        th=math.cos(math.pi - margin),
        mm=math.sin(math.pi - margin) * margin,
        scale=float(scale), easy_margin=easy_margin,
        n_classes=n_classes, c_pad=c_pad, block_c=tc,
        compute_dtype=compute_dtype)

    grid = (b_pad // tb, c_pad // tc)

    logits, loss_vec = pl.pallas_call(
        kernel,
        out_shape=(
            # TODO(synk): if callers only need loss/prec1, the full logits
            # writeback (the 2nd-largest HBM stream) could be dropped or bf16.
            jax.ShapeDtypeStruct((b_pad, c_pad), jnp.float32),
            jax.ShapeDtypeStruct((b_pad, 1), jnp.float32),
        ),
        grid_spec=pltpu.PrefetchScalarGridSpec(
            num_scalar_prefetch=0,
            grid=grid,
            in_specs=[
                pl.BlockSpec((tb, n_out_pad), lambda b, c: (b, 0)),   # x
                pl.BlockSpec((n_out_pad, tc), lambda b, c: (0, c)),   # sub-center 0
                pl.BlockSpec((n_out_pad, tc), lambda b, c: (0, c)),   # sub-center 1
                pl.BlockSpec((tb, 1), lambda b, c: (b, 0)),           # labels
            ],
            out_specs=(
                pl.BlockSpec((tb, tc), lambda b, c: (b, c)),          # logits
                pl.BlockSpec((tb, 1), lambda b, c: (b, 0)),           # per-row loss
            ),
            scratch_shapes=[
                pltpu.VMEM((tb, n_out_pad), compute_dtype),  # normalized x (bf16)
                pltpu.VMEM((tb, 1), jnp.float32),            # running max
                pltpu.VMEM((tb, 1), jnp.float32),            # running sum
                pltpu.VMEM((tb, 1), jnp.float32),            # picked (target) logit
            ],
        ),
        compiler_params=pltpu.CompilerParams(
            dimension_semantics=("parallel", "arbitrary"),
            vmem_limit_bytes=32 * 1024 * 1024,
        ),
    )(xp, w0, w1, lbl)

    logits = logits[:B, :n_classes]
    loss = jnp.mean(loss_vec[:B, 0])                      # nn.CrossEntropyLoss (mean)
    prec1 = 100.0 * jnp.mean(
        (jnp.argmax(logits, axis=-1) == label).astype(jnp.float32))
    # TODO(synk): `equal_error_rate` is an undefined external host-side numpy
    # helper in the reference module; not reproduced here.
    return loss, prec1, logits


def _reference_forward(x, weight, label, *, margin=0.3, scale=15.0,
                       easy_margin=False):
    """Plain-JAX (f32) reference mirroring the PyTorch math."""
    eps = 1e-12
    xn = x / jnp.maximum(jnp.linalg.norm(x, axis=-1, keepdims=True), eps)
    wn = weight / jnp.maximum(jnp.linalg.norm(weight, axis=-1, keepdims=True), eps)
    sim = jnp.dot(xn, wn.T, precision="highest")
    n_classes = weight.shape[0] // 2
    cosine = jnp.max(sim.reshape(-1, n_classes, 2), axis=2)
    sine = jnp.sqrt(jnp.clip(1.0 - cosine ** 2, 0.0, 1.0))
    phi = cosine * math.cos(margin) - sine * math.sin(margin)
    if easy_margin:
        phi = jnp.where(cosine > 0, phi, cosine)
    else:
        th = math.cos(math.pi - margin)
        mm = math.sin(math.pi - margin) * margin
        phi = jnp.where(cosine - th > 0, phi, cosine - mm)
    one_hot = jax.nn.one_hot(label, n_classes, dtype=jnp.float32)
    out = (one_hot * phi + (1.0 - one_hot) * cosine) * scale
    logz = jax.nn.logsumexp(out, axis=-1)
    loss = jnp.mean(logz - jnp.take_along_axis(out, label[:, None], axis=1)[:, 0])
    return loss, out


def _run_case(key, B, n_out, n_classes, *, block_b=512, block_c=1024):
    kx, kw, kl = jax.random.split(key, 3)
    x = jax.random.normal(kx, (B, n_out), dtype=jnp.float32)
    # xavier_normal_(gain=1) on (2*nClasses, nOut)
    xavier_std = math.sqrt(2.0 / (2 * n_classes + n_out))
    weight = xavier_std * jax.random.normal(kw, (2 * n_classes, n_out),
                                            dtype=jnp.float32)
    label = jax.random.randint(kl, (B,), 0, n_classes, dtype=jnp.int32)

    loss, prec1, logits = aamsoftmax_forward(x, weight, label,
                                             margin=0.3, scale=15.0,
                                             block_b=block_b, block_c=block_c)
    jax.block_until_ready((loss, prec1, logits))

    ref_loss, ref_logits = _reference_forward(x, weight, label,
                                              margin=0.3, scale=15.0)
    # bf16 MXU inputs (f32 accumulate) -> slightly looser tolerance vs the
    # "highest"-precision f32 reference; near cosine==th the margin branch can
    # flip, but phi and cosine-mm are continuous there so the error is bounded.
    assert jnp.allclose(logits, ref_logits, atol=0.1, rtol=0.05), "logits mismatch"
    assert jnp.allclose(loss, ref_loss, atol=0.05, rtol=0.05), "loss mismatch"


if __name__ == "__main__":
    key = jax.random.PRNGKey(0)
    k1, k2, k3 = jax.random.split(key, 3)

    # small shape consistent with the module (single class tile, single batch tile)
    _run_case(k1, B=8, n_out=32, n_classes=16)
    # multiple class tiles + class padding (online logsumexp + last-tile mask)
    _run_case(k2, B=16, n_out=64, n_classes=200, block_c=128)
    # multiple class tiles with NO class padding (static mask-skip path)
    _run_case(k3, B=24, n_out=48, n_classes=256, block_c=128)

    print("KERNEL_OK")
</pallas_src>

<mosaic_0001>
module attributes {stable_mosaic.version = 11 : i64} {
  func.func @_aamsoftmax_kernel(%arg0: i32, %arg1: i32, %arg2: memref<8x128xf32, #tpu.memory_space<vmem>>, %arg3: memref<128x128xbf16, #tpu.memory_space<vmem>>, %arg4: memref<128x128xbf16, #tpu.memory_space<vmem>>, %arg5: memref<8x1xi32, #tpu.memory_space<vmem>>, %arg6: memref<8x128xf32, #tpu.memory_space<vmem>>, %arg7: memref<8x1xf32, #tpu.memory_space<vmem>>, %arg8: memref<8x128xbf16, #tpu.memory_space<vmem>>, %arg9: memref<8x1xf32, #tpu.memory_space<vmem>>, %arg10: memref<8x1xf32, #tpu.memory_space<vmem>>, %arg11: memref<8x1xf32, #tpu.memory_space<vmem>>) attributes {dimension_semantics = [#tpu.dimension_semantics<parallel>, #tpu.dimension_semantics<arbitrary>], iteration_bounds = array<i64: 1, 1>, scalar_prefetch = 0 : i64, scratch_operands = 4 : i64, tpu.core_type = #tpu.core_type<tc>, window_params = [{transform_indices = @transform_0, window_bounds = array<i64: 8, 128>}, {transform_indices = @transform_1, window_bounds = array<i64: 128, 128>}, {transform_indices = @transform_2, window_bounds = array<i64: 128, 128>}, {transform_indices = @transform_3, window_bounds = array<i64: 8, 1>}, {transform_indices = @transform_4, window_bounds = array<i64: 8, 128>}, {transform_indices = @transform_5, window_bounds = array<i64: 8, 1>}]} {
    %c0_i32 = arith.constant 0 : i32
    %0 = arith.cmpi eq, %arg1, %c0_i32 : i32
    %1 = arith.extui %0 : i1 to i32
    %c0_i32_0 = arith.constant 0 : i32
    %2 = arith.cmpi ne, %1, %c0_i32_0 : i32
    scf.if %2 {
      %c0_34 = arith.constant 0 : index
      %c0_35 = arith.constant 0 : index
      %70 = vector.load %arg2[%c0_34, %c0_35] : memref<8x128xf32, #tpu.memory_space<vmem>>, vector<8x128xf32>
      %71 = arith.mulf %70, %70 : vector<8x128xf32>
      %cst_36 = arith.constant dense<0.000000e+00> : vector<8xf32>
      %72 = vector.multi_reduction <add>, %71, %cst_36 [1] : vector<8x128xf32> to vector<8xf32>
      %73 = vector.shape_cast %72 : vector<8xf32> to vector<8x1xf32>
      %74 = math.sqrt %73 : vector<8x1xf32>
      %cst_37 = arith.constant 9.99999996E-13 : f32
      %75 = vector.broadcast %cst_37 : f32 to vector<8x1xf32>
      %76 = arith.maximumf %74, %75 : vector<8x1xf32>
      %77 = vector.broadcast %76 : vector<8x1xf32> to vector<8x128xf32>
      %78 = arith.divf %70, %77 : vector<8x128xf32>
      %79 = arith.truncf %78 : vector<8x128xf32> to vector<8x128xbf16>
      %c0_38 = arith.constant 0 : index
      %c0_39 = arith.constant 0 : index
      %80 = vector.load %arg8[%c0_38, %c0_39] : memref<8x128xbf16, #tpu.memory_space<vmem>>, vector<8x128xbf16>
      tpu.vector_store %arg8[%c0_38, %c0_39], %79 {strides = array<i32>} : memref<8x128xbf16, #tpu.memory_space<vmem>>, vector<8x128xbf16>,
    } else {
    }
    %c0 = arith.constant 0 : index
    %c0_1 = arith.constant 0 : index
    %3 = vector.load %arg8[%c0, %c0_1] : memref<8x128xbf16, #tpu.memory_space<vmem>>, vector<8x128xbf16>
    %c0_2 = arith.constant 0 : index
    %c0_3 = arith.constant 0 : index
    %4 = vector.load %arg3[%c0_2, %c0_3] : memref<128x128xbf16, #tpu.memory_space<vmem>>, vector<128x128xbf16>
    %cst = arith.constant dense<0.000000e+00> : vector<8x128xf32>
    %5 = tpu.matmul %3, %4, %cst {dimension_numbers = #tpu.dot_dimension_numbers<[1], [0], [0], [1], [0, 0, 1, 1], [], []>} : vector<8x128xbf16>, vector<128x128xbf16>, vector<8x128xf32> -> vector<8x128xf32>
    %c0_4 = arith.constant 0 : index
    %c0_5 = arith.constant 0 : index
    %6 = vector.load %arg4[%c0_4, %c0_5] : memref<128x128xbf16, #tpu.memory_space<vmem>>, vector<128x128xbf16>
    %cst_6 = arith.constant dense<0.000000e+00> : vector<8x128xf32>
    %7 = tpu.matmul %3, %6, %cst_6 {dimension_numbers = #tpu.dot_dimension_numbers<[1], [0], [0], [1], [0, 0, 1, 1], [], []>} : vector<8x128xbf16>, vector<128x128xbf16>, vector<8x128xf32> -> vector<8x128xf32>
    %8 = arith.maximumf %5, %7 : vector<8x128xf32>
    %c0_7 = arith.constant 0 : index
    %c0_8 = arith.constant 0 : index
    %9 = vector.load %arg5[%c0_7, %c0_8] : memref<8x1xi32, #tpu.memory_space<vmem>>, vector<8x1xi32>
    %c128_i32 = arith.constant 128 : i32
    %10 = arith.muli %arg1, %c128_i32 : i32
    %11 = vector.broadcast %10 : i32 to vector<8x1xi32>
    %12 = arith.subi %9, %11 : vector<8x1xi32>
    %13 = tpu.iota {dimensions = array<i32: 1>} : vector<8x128xi32>
    %14 = vector.broadcast %12 : vector<8x1xi32> to vector<8x128xi32>
    %15 = arith.cmpi eq, %13, %14 : vector<8x128xi32>
    %cst_9 = arith.constant 0.000000e+00 : f32
    %16 = vector.broadcast %cst_9 : f32 to vector<8x128xf32>
    %17 = arith.select %15, %8, %16 : vector<8x128xi1>, vector<8x128xf32>
    %cst_10 = arith.constant dense<0.000000e+00> : vector<8xf32>
    %18 = vector.multi_reduction <add>, %17, %cst_10 [1] : vector<8x128xf32> to vector<8xf32>
    %19 = vector.shape_cast %18 : vector<8xf32> to vector<8x1xf32>
    %20 = arith.mulf %19, %19 : vector<8x1xf32>
    %cst_11 = arith.constant 1.000000e+00 : f32
    %21 = vector.broadcast %cst_11 : f32 to vector<8x1xf32>
    %22 = arith.subf %21, %20 : vector<8x1xf32>
    %cst_12 = arith.constant 0.000000e+00 : f32
    %23 = vector.broadcast %cst_12 : f32 to vector<8x1xf32>
    %24 = arith.maximumf %22, %23 : vector<8x1xf32>
    %25 = math.sqrt %24 : vector<8x1xf32>
    %cst_13 = arith.constant 0.955336511 : f32
    %26 = vector.broadcast %cst_13 : f32 to vector<8x1xf32>
    %27 = arith.mulf %19, %26 : vector<8x1xf32>
    %cst_14 = arith.constant 0.295520216 : f32
    %28 = vector.broadcast %cst_14 : f32 to vector<8x1xf32>
    %29 = arith.mulf %25, %28 : vector<8x1xf32>
    %30 = arith.subf %27, %29 : vector<8x1xf32>
    %cst_15 = arith.constant -0.955336511 : f32
    %31 = vector.broadcast %cst_15 : f32 to vector<8x1xf32>
    %32 = arith.subf %19, %31 : vector<8x1xf32>
    %cst_16 = arith.constant 0.000000e+00 : f32
    %33 = vector.broadcast %cst_16 : f32 to vector<8x1xf32>
    %34 = arith.cmpf ogt, %32, %33 : vector<8x1xf32>
    %cst_17 = arith.constant 0.0886560603 : f32
    %35 = vector.broadcast %cst_17 : f32 to vector<8x1xf32>
    %36 = arith.subf %19, %35 : vector<8x1xf32>
    %37 = arith.select %34, %30, %36 : vector<8x1xi1>, vector<8x1xf32>
    %38 = vector.shape_cast %37 : vector<8x1xf32> to vector<8x1xf32>
    %39 = vector.broadcast %38 : vector<8x1xf32> to vector<8x128xf32>
    %40 = arith.select %15, %39, %8 : vector<8x128xi1>, vector<8x128xf32>
    %cst_18 = arith.constant 1.500000e+01 : f32
    %41 = vector.broadcast %cst_18 : f32 to vector<8x128xf32>
    %42 = arith.mulf %40, %41 : vector<8x128xf32>
    %c0_19 = arith.constant 0 : index
    %c0_20 = arith.constant 0 : index
    %43 = vector.load %arg6[%c0_19, %c0_20] : memref<8x128xf32, #tpu.memory_space<vmem>>, vector<8x128xf32>
    tpu.vector_store %arg6[%c0_19, %c0_20], %42 {strides = array<i32>} : memref<8x128xf32, #tpu.memory_space<vmem>>, vector<8x128xf32>,
    %c128_i32_21 = arith.constant 128 : i32
    %44 = arith.muli %arg1, %c128_i32_21 : i32
    %c16_i32 = arith.constant 16 : i32
    %45 = arith.subi %c16_i32, %44 : i32
    %46 = vector.broadcast %45 : i32 to vector<8x128xi32>
    %47 = arith.cmpi slt, %13, %46 : vector<8x128xi32>
    %cst_22 = arith.constant -1.000000e+30 : f32
    %48 = vector.broadcast %cst_22 : f32 to vector<8x128xf32>
    %49 = arith.select %47, %42, %48 : vector<8x128xi1>, vector<8x128xf32>
    %cst_23 = arith.constant dense<0xFF800000> : vector<8xf32>
    %50 = vector.multi_reduction <maximumf>, %49, %cst_23 [1] : vector<8x128xf32> to vector<8xf32>
    %51 = vector.shape_cast %50 : vector<8xf32> to vector<8x1xf32>
    %c0_i32_24 = arith.constant 0 : i32
    %52 = vector.broadcast %c0_i32_24 : i32 to vector<8x1xi32>
    %53 = arith.cmpi sge, %12, %52 : vector<8x1xi32>
    %c128_i32_25 = arith.constant 128 : i32
    %54 = vector.broadcast %c128_i32_25 : i32 to vector<8x1xi32>
    %55 = arith.cmpi slt, %12, %54 : vector<8x1xi32>
    %56 = arith.andi %53, %55 : vector<8x1xi1>
    %cst_26 = arith.constant 1.500000e+01 : f32
    %57 = vector.broadcast %cst_26 : f32 to vector<8x1xf32>
    %58 = arith.mulf %37, %57 : vector<8x1xf32>
    %cst_27 = arith.constant 0.000000e+00 : f32
    %59 = vector.broadcast %cst_27 : f32 to vector<8x1xf32>
    %60 = arith.select %56, %58, %59 : vector<8x1xi1>, vector<8x1xf32>
    %c0_i32_28 = arith.constant 0 : i32
    %61 = arith.cmpi eq, %arg1, %c0_i32_28 : i32
    %62 = arith.extui %61 : i1 to i32
    %c0_i32_29 = arith.constant 0 : i32
    %63 = arith.cmpi ne, %62, %c0_i32_29 : i32
    scf.if %63 {
      %c0_34 = arith.constant 0 : index
      %c0_35 = arith.constant 0 : index
      %70 = vector.load %arg9[%c0_34, %c0_35] : memref<8x1xf32, #tpu.memory_space<vmem>>, vector<8x1xf32>
      tpu.vector_store %arg9[%c0_34, %c0_35], %51 {strides = array<i32>} : memref<8x1xf32, #tpu.memory_space<vmem>>, vector<8x1xf32>,
      %71 = vector.broadcast %51 : vector<8x1xf32> to vector<8x128xf32>
      %72 = arith.subf %49, %71 : vector<8x128xf32>
      %73 = math.exp %72 : vector<8x128xf32>
      %cst_36 = arith.constant dense<0.000000e+00> : vector<8xf32>
      %74 = vector.multi_reduction <add>, %73, %cst_36 [1] : vector<8x128xf32> to vector<8xf32>
      %75 = vector.shape_cast %74 : vector<8xf32> to vector<8x1xf32>
      %c0_37 = arith.constant 0 : index
      %c0_38 = arith.constant 0 : index
      %76 = vector.load %arg10[%c0_37, %c0_38] : memref<8x1xf32, #tpu.memory_space<vmem>>, vector<8x1xf32>
      tpu.vector_store %arg10[%c0_37, %c0_38], %75 {strides = array<i32>} : memref<8x1xf32, #tpu.memory_space<vmem>>, vector<8x1xf32>,
      %c0_39 = arith.constant 0 : index
      %c0_40 = arith.constant 0 : index
      %77 = vector.load %arg11[%c0_39, %c0_40] : memref<8x1xf32, #tpu.memory_space<vmem>>, vector<8x1xf32>
      tpu.vector_store %arg11[%c0_39, %c0_40], %60 {strides = array<i32>} : memref<8x1xf32, #tpu.memory_space<vmem>>, vector<8x1xf32>,
    } else {
    }
    %c0_i32_30 = arith.constant 0 : i32
    %64 = arith.cmpi sgt, %arg1, %c0_i32_30 : i32
    %65 = arith.extui %64 : i1 to i32
    %c0_i32_31 = arith.constant 0 : i32
    %66 = arith.cmpi ne, %65, %c0_i32_31 : i32
    scf.if %66 {
      %c0_34 = arith.constant 0 : index
      %c0_35 = arith.constant 0 : index
      %70 = vector.load %arg9[%c0_34, %c0_35] : memref<8x1xf32, #tpu.memory_space<vmem>>, vector<8x1xf32>
      %71 = arith.maximumf %70, %51 : vector<8x1xf32>
      %c0_36 = arith.constant 0 : index
      %c0_37 = arith.constant 0 : index
      %72 = vector.load %arg10[%c0_36, %c0_37] : memref<8x1xf32, #tpu.memory_space<vmem>>, vector<8x1xf32>
      %73 = arith.subf %70, %71 : vector<8x1xf32>
      %74 = math.exp %73 : vector<8x1xf32>
      %75 = arith.mulf %72, %74 : vector<8x1xf32>
      %76 = vector.broadcast %71 : vector<8x1xf32> to vector<8x128xf32>
      %77 = arith.subf %49, %76 : vector<8x128xf32>
      %78 = math.exp %77 : vector<8x128xf32>
      %cst_38 = arith.constant dense<0.000000e+00> : vector<8xf32>
      %79 = vector.multi_reduction <add>, %78, %cst_38 [1] : vector<8x128xf32> to vector<8xf32>
      %80 = vector.shape_cast %79 : vector<8xf32> to vector<8x1xf32>
      %81 = arith.addf %75, %80 : vector<8x1xf32>
      %c0_39 = arith.constant 0 : index
      %c0_40 = arith.constant 0 : index
      %82 = vector.load %arg10[%c0_39, %c0_40] : memref<8x1xf32, #tpu.memory_space<vmem>>, vector<8x1xf32>
      tpu.vector_store %arg10[%c0_39, %c0_40], %81 {strides = array<i32>} : memref<8x1xf32, #tpu.memory_space<vmem>>, vector<8x1xf32>,
      %c0_41 = arith.constant 0 : index
      %c0_42 = arith.constant 0 : index
      %83 = vector.load %arg11[%c0_41, %c0_42] : memref<8x1xf32, #tpu.memory_space<vmem>>, vector<8x1xf32>
      %84 = arith.addf %83, %60 : vector<8x1xf32>
      %c0_43 = arith.constant 0 : index
      %c0_44 = arith.constant 0 : index
      %85 = vector.load %arg11[%c0_43, %c0_44] : memref<8x1xf32, #tpu.memory_space<vmem>>, vector<8x1xf32>
      tpu.vector_store %arg11[%c0_43, %c0_44], %84 {strides = array<i32>} : memref<8x1xf32, #tpu.memory_space<vmem>>, vector<8x1xf32>,
      %c0_45 = arith.constant 0 : index
      %c0_46 = arith.constant 0 : index
      %86 = vector.load %arg9[%c0_45, %c0_46] : memref<8x1xf32, #tpu.memory_space<vmem>>, vector<8x1xf32>
      tpu.vector_store %arg9[%c0_45, %c0_46], %71 {strides = array<i32>} : memref<8x1xf32, #tpu.memory_space<vmem>>, vector<8x1xf32>,
    } else {
    }
    %c0_i32_32 = arith.constant 0 : i32
    %67 = arith.cmpi eq, %arg1, %c0_i32_32 : i32
    %68 = arith.extui %67 : i1 to i32
    %c0_i32_33 = arith.constant 0 : i32
    %69 = arith.cmpi ne, %68, %c0_i32_33 : i32
    scf.if %69 {
      %c0_34 = arith.constant 0 : index
      %c0_35 = arith.constant 0 : index
      %70 = vector.load %arg9[%c0_34, %c0_35] : memref<8x1xf32, #tpu.memory_space<vmem>>, vector<8x1xf32>
      %c0_36 = arith.constant 0 : index
      %c0_37 = arith.constant 0 : index
      %71 = vector.load %arg10[%c0_36, %c0_37] : memref<8x1xf32, #tpu.memory_space<vmem>>, vector<8x1xf32>
      %72 = math.log %71 : vector<8x1xf32>
      %73 = arith.addf %70, %72 : vector<8x1xf32>
      %c0_38 = arith.constant 0 : index
      %c0_39 = arith.constant 0 : index
      %74 = vector.load %arg11[%c0_38, %c0_39] : memref<8x1xf32, #tpu.memory_space<vmem>>, vector<8x1xf32>
      %75 = arith.subf %73, %74 : vector<8x1xf32>
      %c0_40 = arith.constant 0 : index
      %c0_41 = arith.constant 0 : index
      %76 = vector.load %arg7[%c0_40, %c0_41] : memref<8x1xf32, #tpu.memory_space<vmem>>, vector<8x1xf32>
      tpu.vector_store %arg7[%c0_40, %c0_41], %75 {strides = array<i32>} : memref<8x1xf32, #tpu.memory_space<vmem>>, vector<8x1xf32>,
    } else {
    }
    return
  }
  func.func @transform_0(%arg0: i32, %arg1: i32) -> (i32, i32) {
    %c0_i32 = arith.constant 0 : i32
    %c0_i32_0 = arith.constant 0 : i32
    return %arg0, %c0_i32 : i32, i32
  }
  func.func @transform_1(%arg0: i32, %arg1: i32) -> (i32, i32) {
    %c0_i32 = arith.constant 0 : i32
    %c0_i32_0 = arith.constant 0 : i32
    return %c0_i32, %arg1 : i32, i32
  }
  func.func @transform_2(%arg0: i32, %arg1: i32) -> (i32, i32) {
    %c0_i32 = arith.constant 0 : i32
    %c0_i32_0 = arith.constant 0 : i32
    return %c0_i32, %arg1 : i32, i32
  }
  func.func @transform_3(%arg0: i32, %arg1: i32) -> (i32, i32) {
    %c0_i32 = arith.constant 0 : i32
    %c0_i32_0 = arith.constant 0 : i32
    return %arg0, %c0_i32 : i32, i32
  }
  func.func @transform_4(%arg0: i32, %arg1: i32) -> (i32, i32) {
    %c0_i32 = arith.constant 0 : i32
    return %arg0, %arg1 : i32, i32
  }
  func.func @transform_5(%arg0: i32, %arg1: i32) -> (i32, i32) {
    %c0_i32 = arith.constant 0 : i32
    %c0_i32_0 = arith.constant 0 : i32
    return %arg0, %c0_i32 : i32, i32
  }
}

</mosaic_0001>

<bundles_post_ra>
// kernel: tpu_custom_call.1
= control target key start
LH: loop header
LB: loop body
LE: loop exit
PB: predicated region body
PF: predicated region fallthrough
CT: control target
= control target key end

     0   :  { %11 = vsyncpa [#allocation7], 0  ;;  %s672_s0 = inlined_call_operand.vmem [shape: f32[8,128], index: 0, kind: input, shape index: {}]   ;;  %s673_s1 = inlined_call_operand.hbm [shape: bf16[128,128], index: 1, kind: input, shape index: {}]   ;;  %s674_s2 = inlined_call_operand.hbm [shape: bf16[128,128], index: 2, kind: input, shape index: {}]   ;;  %s675_s3 = inlined_call_operand.vmem [shape: s32[8,1], index: 3, kind: input, shape index: {}]   ;;  %s676_s4 = inlined_call_operand.hbm [shape: f32[8,128], index: 4, kind: output, shape index: {0}]   ;;  %s677_s5 = inlined_call_operand.vmem [shape: f32[8,1], index: 5, kind: output, shape index: {1}]  }
   0x1   :  { %12 = vsyncpa [#allocation10], 0 }
   0x2   :  { %13 = vsyncpa [#allocation8], 0  ;;  %s578_s18 = smov [#allocation6]   ;;  %s506_s22 = scalar_lea.hbm %s673_s1, 1024 }
   0x3   :  { %s21_s19 = sshll.u32 %s578_s18, 4  ;;  %p507_p0 = scmp.ne.s32.totalorder %s673_s1, %s506_s22  ;;  %s22_s19 = int_to_ptr.vmem [resolvable:$true] %s21_s19 }
   0x4   :  { %p510_p1 = scmp.lt.u32.totalorder %s506_s22, %s673_s1 }
   0x6   :  { %p512_p2 = pnand %p510_p1, %p507_p0 }
   0x8   :  { %515 = shalt.err (!%p512_p2)
}
   0x9   :  { %s516_s27 = scalar_lea.vmem %s22_s19, 1024  ;;  %p521_p4 = scmp.lt.s32.totalorder %s22_s19, %s22_s19 }
   0xa   :  { %p517_p3 = scmp.ne.s32.totalorder %s22_s19, %s516_s27  ;;  %p522_p5 = scmp.lt.s32.totalorder %s516_s27, %s516_s27 }
   0xc   :  { %p523_p6 = por %p522_p5, %p521_p4 }
   0xe   :  { %p524_p7 = pnand %p523_p6, %p517_p3 }
  0x10   :  { %527 = shalt.err (!%p524_p7)
}
  0x11   :  { %s579_s28 = smov 64   ;;  %s580_s29 = smov 4  }
  0x12   :  { %27 = dma.hbm_to_vmem [thread:$0]  %s673_s1, 1024, %s22_s19, [#allocation7], %s579_s28, %s579_s28, %s580_s29  }
  0x13   :  { %s581_s7 = smov [#allocation9]   ;;  %s528_s11 = scalar_lea.hbm %s674_s2, 1024 }
  0x14   :  { %s33_s8 = sshll.u32 %s581_s7, 4  ;;  %p529_p8 = scmp.ne.s32.totalorder %s674_s2, %s528_s11  ;;  %s34_s8 = int_to_ptr.vmem [resolvable:$true] %s33_s8 }
  0x15   :  { %p532_p9 = scmp.lt.u32.totalorder %s528_s11, %s674_s2 }
  0x17   :  { %p534_p10 = pnand %p532_p9, %p529_p8 }
  0x19   :  { %537 = shalt.err (!%p534_p10)
}
  0x1a   :  { %s538_s16 = scalar_lea.vmem %s34_s8, 1024  ;;  %p543_p12 = scmp.lt.s32.totalorder %s34_s8, %s34_s8 }
  0x1b   :  { %p539_p11 = scmp.ne.s32.totalorder %s34_s8, %s538_s16  ;;  %p544_p13 = scmp.lt.s32.totalorder %s538_s16, %s538_s16 }
  0x1d   :  { %p545_p0 = por %p544_p13, %p543_p12 }
  0x1f   :  { %p546_p1 = pnand %p545_p0, %p539_p11 }
  0x21   :  { %549 = shalt.err (!%p546_p1)
}
  0x22   :  { %39 = dma.hbm_to_vmem [thread:$0]  %s674_s2, 1024, %s34_s8, [#allocation10], %s579_s28, %s579_s28, %s580_s29  }
  0x23   :  { %572 = dma.done.wait [#allocation7], 1024  }
  0x24   :  { %573 = vsyncadd [#allocation7], 4294966272 }
  0x25   :  { %574 = dma.done.wait [#allocation10], 1024  }
  0x26   :  { %575 = vsyncadd [#allocation10], 4294966272  ;;  %v643_v0 = vld [vmem:[%s672_s0] sm:$0xff]  ;;  %v582_v4 = vmov 0.0   ;;  %v484_v7 = vld [vmem:[#allocation6 + $0x10] sm:$0xff]   ;;  %vm583_vm0 = vmmov 0   ;;  %v283_v32 = vlaneseq }
  0x27   :  { %v54_v1 = vmul.f32 %v643_v0, %v643_v0  ;;  %v480_v2 = vld [vmem:[#allocation6] sm:$0xff]   ;;  %431 = vmatprep.subr.bf16.mxu0 %v582_v4  ;;  %451 = vmatprep.subr.bf16.mxu1 %v582_v4  ;;  %v482_v5 = vld [vmem:[#allocation6 + $0x8] sm:$0xff]   ;;  %v485_v8 = vld [vmem:[#allocation9 + $0x10] sm:$0xff]   ;;  %v584_v20 = vmov 0   ;;  %vm326_vm11 = vcmask 7168  }
  0x28   :  { %v481_v3 = vld [vmem:[#allocation9] sm:$0xff]   ;;  %432 = vmatpush3.bf16.msra.mxu0 %v480_v2  ;;  %v483_v6 = vld [vmem:[#allocation9 + $0x8] sm:$0xff]   ;;  %v486_v9 = vld [vmem:[#allocation6 + $0x18] sm:$0xff]   ;;  %447 = vmatprep.mubr.msk.bf16.mxu0 %vm583_vm0, %v582_v4  ;;  %v284_v33 = vand.u32 127, %v283_v32 }
  0x29   :  { %55 = vadd.xlane.f32.xlu0 %v54_v1  ;;  %452 = vmatpush3.bf16.msra.mxu1 %v481_v3  ;;  %v487_v10 = vld [vmem:[#allocation9 + $0x18] sm:$0xff]   ;;  %v488_v11 = vld [vmem:[#allocation6 + $0x20] sm:$0xff]   ;;  %v490_v13 = vld [vmem:[#allocation6 + $0x28] sm:$0xff]  }
  0x2a   :  { %433 = vmatprep.subr.bf16.mxu0 %v582_v4  ;;  %453 = vmatprep.subr.bf16.mxu1 %v582_v4  ;;  %v489_v12 = vld [vmem:[#allocation9 + $0x20] sm:$0xff]   ;;  %v491_v14 = vld [vmem:[#allocation9 + $0x28] sm:$0xff]   ;;  %v492_v15 = vld [vmem:[#allocation6 + $0x30] sm:$0xff]   ;;  %vm314_vm10 = vcmp.lt.s32.totalorder %v284_v33, 16 }
  0x2b   :  { %v493_v16 = vld [vmem:[#allocation9 + $0x30] sm:$0xff]   ;;  %v494_v17 = vld [vmem:[#allocation6 + $0x38] sm:$0xff]   ;;  %467 = vmatprep.mubr.msk.bf16.mxu1 %vm583_vm0, %v582_v4  ;;  %v279_v19 = vld [vmem:[%s675_s3] sm:$0xff]  ;;  %479 = vset.pattern.permute.xlu0 %v584_v20  ;;  %s585_s3 = smov [#allocation11]  }
  0x2c   :  { %434 = vmatpush3.bf16.msra.mxu0 %v482_v5  ;;  %v495_v18 = vld [vmem:[#allocation9 + $0x38] sm:$0xff]   ;;  %vm318_vm6 = vcmp.ge.s32.totalorder %v279_v19, 0  ;;  %vm319_vm7 = vcmp.lt.s32.totalorder %v279_v19, 128  ;;  %s381_s20 = sshll.u32 %s585_s3, 4  ;;  %s382_s20 = int_to_ptr.vmem [resolvable:$true] %s381_s20 }
  0x2d   :  { %454 = vmatpush3.bf16.msra.mxu1 %v483_v6  ;;  %435 = vmatprep.subr.bf16.mxu0 %v582_v4  ;;  %vm320_vm9 = vmand %vm318_vm6, %vm319_vm7  ;;  %s550_s21 = scalar_lea.vmem %s382_s20, 128  ;;  %p555_p3 = scmp.lt.s32.totalorder %s382_s20, %s382_s20 }
  0x2e   :  { %455 = vmatprep.subr.bf16.mxu1 %v582_v4  ;;  %p551_p2 = scmp.ne.s32.totalorder %s382_s20, %s550_s21  ;;  %p556_p4 = scmp.lt.s32.totalorder %s550_s21, %s550_s21 }
  0x30   :  { %436 = vmatpush3.bf16.msra.mxu0 %v484_v7  ;;  %p557_p5 = por %p556_p4, %p555_p3 }
  0x31   :  { %456 = vmatpush3.bf16.msra.mxu1 %v485_v8  ;;  %437 = vmatprep.subr.bf16.mxu0 %v582_v4 }
  0x32   :  { %457 = vmatprep.subr.bf16.mxu1 %v582_v4  ;;  %p558_p6 = pnand %p557_p5, %p551_p2 }
  0x34   :  { %438 = vmatpush3.bf16.msra.mxu0 %v486_v9 }
  0x35   :  { %458 = vmatpush3.bf16.msra.mxu1 %v487_v10  ;;  %439 = vmatprep.subr.bf16.mxu0 %v582_v4 }
  0x36   :  { %459 = vmatprep.subr.bf16.mxu1 %v582_v4 }
  0x38   :  { %440 = vmatpush3.bf16.msra.mxu0 %v488_v11 }
  0x39   :  { %460 = vmatpush3.bf16.msra.mxu1 %v489_v12  ;;  %441 = vmatprep.subr.bf16.mxu0 %v582_v4 }
  0x3a   :  { %461 = vmatprep.subr.bf16.mxu1 %v582_v4 }
  0x3c   :  { %442 = vmatpush3.bf16.msra.mxu0 %v490_v13 }
  0x3d   :  { %462 = vmatpush3.bf16.msra.mxu1 %v491_v14  ;;  %443 = vmatprep.subr.bf16.mxu0 %v582_v4 }
  0x3e   :  { %463 = vmatprep.subr.bf16.mxu1 %v582_v4 }
  0x3f   :  { %286 = vperm.xlu0 %479, %v279_v19  }
  0x40   :  { %444 = vmatpush3.bf16.msra.mxu0 %v492_v15 }
  0x41   :  { %464 = vmatpush3.bf16.msra.mxu1 %v493_v16  ;;  %445 = vmatprep.subr.bf16.mxu0 %v582_v4 }
  0x42   :  { %465 = vmatprep.subr.bf16.mxu1 %v582_v4 }
  0x44   :  { %446 = vmatpush3.bf16.msra.mxu0 %v494_v17 }
  0x45   :  { %466 = vmatpush3.bf16.msra.mxu1 %v495_v18 }
  0xb6   :  { %v56_v21 = vpop.xlane.xlu0 %55 }
  0xb7   :  { %496 = vrsqrt.f32 %v56_v21  ;;  %vm59_vm1 = vcmp.eq.f32.partialorder %v56_v21, inf  ;;  %v62_v24 = vand.u32 2147483648, %v56_v21  ;;  %vm61_vm2 = vcmp.eq.f32.partialorder %v56_v21, 0.0 }
  0xbe   :  { %v287_v34 = vpop.permute.xlu0 %286 }
  0xbf   :  { %vm288_vm3 = vcmp.eq.s32.totalorder %v284_v33, %v287_v34 }
  0xc1   :  { %v497_v22 = vpop.eup %496 }
  0xc2   :  { %v58_v23 = vmul.f32 %v497_v22, %v56_v21 }
  0xc4   :  { %v60_v25 = vsel %vm59_vm1, %v56_v21, %v58_v23 }
  0xc5   :  { %v63_v26 = vsel %vm61_vm2, %v62_v24, %v60_v25 }
  0xc6   :  { %v64_v27 = vmax.f32 %v63_v26, 1e-12 }
  0xc8   :  { %498 = vrcp.f32 %v64_v27 }
  0xd2   :  { %v499_v28 = vpop.eup %498 }
  0xd3   :  { %v66_v29 = vmul.f32 %v499_v28, %v643_v0 }
  0xd5   :  { %v67_v30 = vpack.c.bf16 %v66_v29, %v66_v29 }
  0xd7   :  { %68 = vst [vmem:[#allocation2] sm:$0xf] %v67_v30 }
  0xde   :  { %v69_v31 = vld [vmem:[#allocation2] sm:$0xf] }
  0xdf   :  { %448 = vmatmul.mubr.bf16.vlgmr.msra.gmra.mrb[0].mxu0 %v69_v31  ;;  %468 = vmatmul.mubr.bf16.vlgmr.msra.gmra.mrb[0].mxu1 %v69_v31 }
 0x1b2   :  { %v168_v35 = vpop.f32.mrb[0].mxu0  ;;  %v272_v36 = vpop.f32.mrb[0].mxu1 }
 0x1b3   :  { %v278_v37 = vmax.f32 %v168_v35, %v272_v36  ;;  %v449_v38 = vpop.f32.mrb[1].mxu0  ;;  %v469_v39 = vpop.f32.mrb[1].mxu1 }
 0x1b4   :  { %v171_v40 = vpop.f32.mrb[2].mxu0  ;;  %v275_v41 = vpop.f32.mrb[2].mxu1 }
 0x1b5   :  { %v450_v42 = vpop.f32.mrb[3].mxu0  ;;  %v470_v43 = vpop.f32.mrb[3].mxu1  ;;  %v289_v44 = vsel %vm288_vm3, %v278_v37, 0.0 }
 0x1b6   :  { %290 = vadd.xlane.f32.xlu1 %v289_v44 }
 0x243   :  { %v291_v45 = vpop.xlane.xlu1 %290 }
 0x244   :  { %v292_v46 = vmul.f32 %v291_v45, %v291_v45  ;;  %v411_v54 = vadd.f32 0.9553365, %v291_v45  ;;  %v302_v55 = vmul.f32 0.9553365, %v291_v45  ;;  %v412_v58 = vadd.f32 -0.08865606, %v291_v45 }
 0x246   :  { %v293_v47 = vsub.f32 1.0, %v292_v46  ;;  %vm306_vm8 = vcmp.gt.f32.partialorder %v411_v54, 0.0 }
 0x248   :  { %v294_v48 = vmax.f32 %v293_v47, 0.0 }
 0x24a   :  { %500 = vrsqrt.f32 %v294_v48  ;;  %vm297_vm4 = vcmp.eq.f32.partialorder %v294_v48, inf  ;;  %v300_v51 = vand.u32 2147483648, %v294_v48  ;;  %vm299_vm5 = vcmp.eq.f32.partialorder %v294_v48, 0.0 }
 0x254   :  { %v501_v49 = vpop.eup %500 }
 0x255   :  { %v296_v50 = vmul.f32 %v501_v49, %v294_v48 }
 0x257   :  { %v298_v52 = vsel %vm297_vm4, %v294_v48, %v296_v50 }
 0x258   :  { %v301_v53 = vsel %vm299_vm5, %v300_v51, %v298_v52 }
 0x259   :  { %v303_v56 = vmul.f32 0.29552022, %v301_v53 }
 0x25b   :  { %v304_v57 = vsub.f32 %v302_v55, %v303_v56 }
 0x25d   :  { %v308_v59 = vsel %vm306_vm8, %v304_v57, %v412_v58 }
 0x25e   :  { %v309_v60 = vsel %vm288_vm3, %v308_v59, %v278_v37  ;;  %v321_v61 = vmul.f32 15.0, %v308_v59 }
 0x25f   :  { %v310_v62 = vmul.f32 15.0, %v309_v60 }
 0x260   :  { %v322_v63 = vsel %vm320_vm9, %v321_v61, 0.0 }
 0x261   :  { %v315_v0 = vsel %vm314_vm10, %v310_v62, -1e+30  ;;  %311 = vst [vmem:[#allocation11] sm:$0xff] %v310_v62  ;;  %334 = vst.msk [vmem:[#allocation5] sm:$0xff] %vm326_vm11, %v322_v63 }
 0x262   :  { %316 = vmax.xlane.f32.xlu1 %v315_v0 }
 0x2ef   :  { %v317_v1 = vpop.xlane.xlu1 %316 }
 0x2f0   :  { %327 = vst.msk [vmem:[#allocation3] sm:$0xff] %vm326_vm11, %v317_v1  ;;  %v328_v2 = vsub.f32 %v315_v0, %v317_v1 }
 0x2f2   :  { %v329_v3 = vmul.f32 1.442695, %v328_v2 }
 0x2f4   :  { %502 = vpow2.f32 %v329_v3 }
 0x2fe   :  { %v503_v4 = vpop.eup %502 }
 0x2ff   :  { %331 = vadd.xlane.f32.xlu1 %v503_v4 }
 0x300   :  { %561 = shalt.err (!%p558_p6)
}
 0x301   :  { %s562_s24 = scalar_lea.hbm %s676_s4, 128 }
 0x302   :  { %p563_p7 = scmp.ne.s32.totalorder %s676_s4, %s562_s24  ;;  %p566_p8 = scmp.lt.u32.totalorder %s562_s24, %s676_s4 }
 0x304   :  { %p568_p9 = pnand %p566_p8, %p563_p7 }
 0x306   :  { %571 = shalt.err (!%p568_p9)
}
 0x307   :  { %384 = dma.vmem_to_hbm [thread:$0]  %s382_s20, 128, %s676_s4, [#allocation8]   ;;  %v366_v9 = vld [vmem:[#allocation3] sm:$0xff]  ;;  %v371_v11 = vld [vmem:[#allocation5] sm:$0xff] }
 0x38c   :  { %v332_v5 = vpop.xlane.xlu1 %331 }
 0x38d   :  { %333 = vst.msk [vmem:[#allocation4] sm:$0xff] %vm326_vm11, %v332_v5 }
 0x394   :  { %v367_v6 = vld [vmem:[#allocation4] sm:$0xff] }
 0x395   :  { %504 = vlog2.f32 %v367_v6 }
 0x39f   :  { %v505_v7 = vpop.eup %504 }
 0x3a0   :  { %v369_v8 = vmul.f32 0.6931472, %v505_v7 }
 0x3a2   :  { %v370_v10 = vadd.f32 %v369_v8, %v366_v9 }
 0x3a4   :  { %v372_v12 = vsub.f32 %v370_v10, %v371_v11 }
 0x3a6   :  { %374 = vst.msk [vmem:[%s677_s5] sm:$0xff] %vm326_vm11, %v372_v12 }
 0x3a7   :  { %576 = dma.done.wait [#allocation8], 128  }
 0x3a8   :  { %577 = vsyncadd [#allocation8], 4294967168 }
 0x3a9   :  { %392 = vsyncpa [#allocation7], 1 }
 0x3aa   :  { %393 = vsyncpa [#allocation10], 1 }
 0x3ab   :  { %394 = vsyncpa [#allocation8], 1 }

</bundles_post_ra>
